<compile_context>
chip_gen: v7x
topology: tpu7x:2x2x1
jax: 0.10.0
libtpu: 0.0.40
codegen_flags: <defaults>
</compile_context>

<pallas_src>
import jax
import jax.numpy as jnp
from jax import lax
from jax.experimental import pallas as pl
from jax.experimental.pallas import tpu as pltpu


def _attentive_pooling_kernel(chem_ref, prot_ref, param_ref,
                              rep_chem_ref, rep_prot_ref):
    chem = chem_ref[...]                      # (TB, C) native dtype
    prot = prot_ref[...]                      # (TB, P) native dtype
    p_bf16 = param_ref[...]                   # (C, P)  bf16, already relu'd,
                                              #         VMEM-resident across grid

    chem_bf16 = chem.astype(jnp.bfloat16)
    prot_bf16 = prot.astype(jnp.bfloat16)

    # wm_chem = relu(prot @ p.T) -> (TB, C); contract the last dim of BOTH
    # operands so no (P, C) transpose of the weight is ever materialized.
    wm_chem = lax.dot_general(prot_bf16, p_bf16, (((1,), (1,)), ((), ())),
                              preferred_element_type=jnp.float32)
    wm_chem = jnp.maximum(wm_chem, 0.0)

    # wm_prot = relu(chem @ p) -> (TB, P)
    wm_prot = lax.dot_general(chem_bf16, p_bf16, (((1,), (0,)), ((), ())),
                              preferred_element_type=jnp.float32)
    wm_prot = jnp.maximum(wm_prot, 0.0)

    # Numerically stable softmax over the last dim (f32, exact reciprocal —
    # free while the kernel is HBM-bound, keeps rows summing to exactly 1).
    m_c = jnp.max(wm_chem, axis=-1, keepdims=True)
    e_c = jnp.exp(wm_chem - m_c)
    score_chem = e_c / jnp.sum(e_c, axis=-1, keepdims=True)

    m_p = jnp.max(wm_prot, axis=-1, keepdims=True)
    e_p = jnp.exp(wm_prot - m_p)
    score_prot = e_p / jnp.sum(e_p, axis=-1, keepdims=True)

    # Attention-weighted representations (lane-dense stores in input dtype).
    rep_chem_ref[...] = (chem.astype(jnp.float32) * score_chem
                         ).astype(rep_chem_ref.dtype)
    rep_prot_ref[...] = (prot.astype(jnp.float32) * score_prot
                         ).astype(rep_prot_ref.dtype)


def _round_up(x, m):
    return ((x + m - 1) // m) * m


def attentive_pooling(chem_embedding, prot_embedding, param, *, block_b=512):
    """rep_chem (B, C), rep_prot (B, P) = AttentivePooling(chem, prot; param).

    Embeddings stay in their native dtype (f32 or bf16); outputs match the
    input dtypes. `param` is the raw (C, P) parameter; relu is applied here
    once (dropout is identity in eval mode).
    """
    B, C = chem_embedding.shape
    Bp, P = prot_embedding.shape
    assert B == Bp and param.shape == (C, P)

    # Grid-invariant weight prep: relu once, bf16 for the MXU (halves its
    # resident VMEM footprint and one-time DMA).
    param_relu_bf16 = jnp.maximum(param, 0.0).astype(jnp.bfloat16)

    # --- batch tile selection ------------------------------------------------
    # * multiple of 8 (sublane) whenever the batch grid has >1 step
    # * at least 2 grid steps when B >= 16 so a "parallel" batch axis can be
    #   sharded across v7x's two TensorCores (harmless on v5e/v6e)
    # * capped at block_b (512 default: ~85% of HBM roofline on v6e, and the
    #   double-buffered tiles stay tiny vs. every generation's VMEM)
    if B < 16:
        tb = B                                # single full-batch block
    else:
        tb = min(max(8, (block_b // 8) * 8),
                 _round_up(pl.cdiv(B, 2), 8))  # guarantees >= 2 grid steps
    num_blocks = pl.cdiv(B, tb)               # ragged last block is fine:
                                              # Pallas drops OOB writes and
                                              # softmax is strictly per-row.

    in_chem_b = chem_embedding.dtype.itemsize
    in_prot_b = prot_embedding.dtype.itemsize
    out_chem_b = in_chem_b
    out_prot_b = in_prot_b

    cost = pl.CostEstimate(
        flops=4 * B * C * P,                              # two matmuls
        transcendentals=B * (C + P),                      # softmax exps
        bytes_accessed=(B * C * (in_chem_b + out_chem_b)
                        + B * P * (in_prot_b + out_prot_b)
                        + C * P * 2),                     # bf16 param
    )

    # VMEM budget: double-buffered in+out activation tiles + resident param,
    # plus generous scratch headroom; capped well under v7x's 64 MiB physical.
    tile_bytes = 2 * tb * (C * in_chem_b + P * in_prot_b
                           + C * out_chem_b + P * out_prot_b)
    vmem_limit = min(48 << 20, max(16 << 20, tile_bytes + C * P * 2 + (8 << 20)))

    rep_chem, rep_prot = pl.pallas_call(
        _attentive_pooling_kernel,
        out_shape=(
            jax.ShapeDtypeStruct((B, C), chem_embedding.dtype),
            jax.ShapeDtypeStruct((B, P), prot_embedding.dtype),
        ),
        grid=(num_blocks,),
        in_specs=[
            pl.BlockSpec((tb, C), lambda i: (i, 0)),   # chem tile
            pl.BlockSpec((tb, P), lambda i: (i, 0)),   # prot tile
            pl.BlockSpec((C, P), lambda i: (0, 0)),    # param resident (one DMA)
        ],
        out_specs=(
            pl.BlockSpec((tb, C), lambda i: (i, 0)),
            pl.BlockSpec((tb, P), lambda i: (i, 0)),
        ),
        compiler_params=pltpu.CompilerParams(
            dimension_semantics=("parallel",),         # megacore on v7x
            vmem_limit_bytes=int(vmem_limit),
        ),
        cost_estimate=cost,
    )(chem_embedding, prot_embedding, param_relu_bf16)

    return rep_chem, rep_prot


def _reference(chem, prot, param):
    """Pure-JAX reference mirroring the kernel's precision choices
    (bf16 MXU inputs, f32 accumulation, f32 softmax)."""
    p = jnp.maximum(param, 0.0).astype(jnp.bfloat16)
    wm_chem = lax.dot_general(prot.astype(jnp.bfloat16), p,
                              (((1,), (1,)), ((), ())),
                              preferred_element_type=jnp.float32)
    wm_chem = jnp.maximum(wm_chem, 0.0)
    wm_prot = lax.dot_general(chem.astype(jnp.bfloat16), p,
                              (((1,), (0,)), ((), ())),
                              preferred_element_type=jnp.float32)
    wm_prot = jnp.maximum(wm_prot, 0.0)
    rep_chem = chem.astype(jnp.float32) * jax.nn.softmax(wm_chem, axis=-1)
    rep_prot = prot.astype(jnp.float32) * jax.nn.softmax(wm_prot, axis=-1)
    return rep_chem.astype(chem.dtype), rep_prot.astype(prot.dtype)


if __name__ == "__main__":
    B = 32                     # batch
    CHEM_HIDDEN = 128          # chem_hidden_size (multiple of 128 -> lane dense)
    PROT_HIDDEN = 256          # prot_hidden_size

    key = jax.random.PRNGKey(0)
    k_chem, k_prot, k_param = jax.random.split(key, 3)

    chem = jax.random.normal(k_chem, (B, CHEM_HIDDEN), dtype=jnp.float32)
    prot = jax.random.normal(k_prot, (B, PROT_HIDDEN), dtype=jnp.float32)
    # nn.Parameter(torch.zeros(...)) is degenerate; use small random values so
    # the kernel computes something non-trivial.
    param = 0.1 * jax.random.normal(k_param, (CHEM_HIDDEN, PROT_HIDDEN),
                                    dtype=jnp.float32)

    # At B=32 the tile-selection logic picks tb=16 -> a 2-step "parallel"
    # batch grid (exercises the multi-block path and v7x megacore sharding).
    rep_chem, rep_prot = attentive_pooling(chem, prot, param)
    rep_chem = jax.block_until_ready(rep_chem)
    rep_prot = jax.block_until_ready(rep_prot)

    ref_chem, ref_prot = _reference(chem, prot, param)
    # Tolerance accounts for bf16 MXU inputs / accumulation order.
    assert jnp.allclose(rep_chem, ref_chem, atol=1e-2, rtol=1e-2)
    assert jnp.allclose(rep_prot, ref_prot, atol=1e-2, rtol=1e-2)

    print("KERNEL_OK")
</pallas_src>

<mosaic_0001>
module attributes {stable_mosaic.version = 11 : i64} {
  func.func @_attentive_pooling_kernel(%arg0: i32, %arg1: memref<16x128xf32, #tpu.memory_space<vmem>>, %arg2: memref<16x256xf32, #tpu.memory_space<vmem>>, %arg3: memref<128x256xbf16, #tpu.memory_space<vmem>>, %arg4: memref<16x128xf32, #tpu.memory_space<vmem>>, %arg5: memref<16x256xf32, #tpu.memory_space<vmem>>) attributes {dimension_semantics = [#tpu.dimension_semantics<parallel>], iteration_bounds = array<i64: 2>, scalar_prefetch = 0 : i64, scratch_operands = 0 : i64, tpu.core_type = #tpu.core_type<tc>, window_params = [{transform_indices = @transform_0, window_bounds = array<i64: 16, 128>}, {transform_indices = @transform_1, window_bounds = array<i64: 16, 256>}, {pipeline_mode = #tpu.pipeline_mode<synchronous>, transform_indices = @transform_2, window_bounds = array<i64: 128, 256>}, {transform_indices = @transform_3, window_bounds = array<i64: 16, 128>}, {transform_indices = @transform_4, window_bounds = array<i64: 16, 256>}]} {
    %c0 = arith.constant 0 : index
    %c0_0 = arith.constant 0 : index
    %0 = vector.load %arg1[%c0, %c0_0] : memref<16x128xf32, #tpu.memory_space<vmem>>, vector<16x128xf32>
    %c0_1 = arith.constant 0 : index
    %c0_2 = arith.constant 0 : index
    %1 = vector.load %arg2[%c0_1, %c0_2] : memref<16x256xf32, #tpu.memory_space<vmem>>, vector<16x256xf32>
    %c0_3 = arith.constant 0 : index
    %c0_4 = arith.constant 0 : index
    %2 = vector.load %arg3[%c0_3, %c0_4] : memref<128x256xbf16, #tpu.memory_space<vmem>>, vector<128x256xbf16>
    %3 = arith.truncf %0 : vector<16x128xf32> to vector<16x128xbf16>
    %4 = arith.truncf %1 : vector<16x256xf32> to vector<16x256xbf16>
    %cst = arith.constant dense<0.000000e+00> : vector<16x128xf32>
    %5 = tpu.matmul %4, %2, %cst {dimension_numbers = #tpu.dot_dimension_numbers<[1], [1], [0], [0], [0, 0, 1, 0], [], []>} : vector<16x256xbf16>, vector<128x256xbf16>, vector<16x128xf32> -> vector<16x128xf32>
    %cst_5 = arith.constant 0.000000e+00 : f32
    %6 = vector.broadcast %cst_5 : f32 to vector<16x128xf32>
    %7 = arith.maximumf %5, %6 : vector<16x128xf32>
    %cst_6 = arith.constant dense<0.000000e+00> : vector<16x256xf32>
    %8 = tpu.matmul %3, %2, %cst_6 {dimension_numbers = #tpu.dot_dimension_numbers<[1], [0], [0], [1], [0, 0, 1, 1], [], []>} : vector<16x128xbf16>, vector<128x256xbf16>, vector<16x256xf32> -> vector<16x256xf32>
    %cst_7 = arith.constant 0.000000e+00 : f32
    %9 = vector.broadcast %cst_7 : f32 to vector<16x256xf32>
    %10 = arith.maximumf %8, %9 : vector<16x256xf32>
    %cst_8 = arith.constant dense<0xFF800000> : vector<16xf32>
    %11 = vector.multi_reduction <maximumf>, %7, %cst_8 [1] : vector<16x128xf32> to vector<16xf32>
    %12 = vector.shape_cast %11 : vector<16xf32> to vector<16x1xf32>
    %13 = vector.broadcast %12 : vector<16x1xf32> to vector<16x128xf32>
    %14 = arith.subf %7, %13 : vector<16x128xf32>
    %15 = math.exp %14 : vector<16x128xf32>
    %cst_9 = arith.constant dense<0.000000e+00> : vector<16xf32>
    %16 = vector.multi_reduction <add>, %15, %cst_9 [1] : vector<16x128xf32> to vector<16xf32>
    %17 = vector.shape_cast %16 : vector<16xf32> to vector<16x1xf32>
    %18 = vector.broadcast %17 : vector<16x1xf32> to vector<16x128xf32>
    %19 = arith.divf %15, %18 : vector<16x128xf32>
    %cst_10 = arith.constant dense<0xFF800000> : vector<16xf32>
    %20 = vector.multi_reduction <maximumf>, %10, %cst_10 [1] : vector<16x256xf32> to vector<16xf32>
    %21 = vector.shape_cast %20 : vector<16xf32> to vector<16x1xf32>
    %22 = vector.broadcast %21 : vector<16x1xf32> to vector<16x256xf32>
    %23 = arith.subf %10, %22 : vector<16x256xf32>
    %24 = math.exp %23 : vector<16x256xf32>
    %cst_11 = arith.constant dense<0.000000e+00> : vector<16xf32>
    %25 = vector.multi_reduction <add>, %24, %cst_11 [1] : vector<16x256xf32> to vector<16xf32>
    %26 = vector.shape_cast %25 : vector<16xf32> to vector<16x1xf32>
    %27 = vector.broadcast %26 : vector<16x1xf32> to vector<16x256xf32>
    %28 = arith.divf %24, %27 : vector<16x256xf32>
    %29 = arith.mulf %0, %19 : vector<16x128xf32>
    %c0_12 = arith.constant 0 : index
    %c0_13 = arith.constant 0 : index
    %30 = vector.load %arg4[%c0_12, %c0_13] : memref<16x128xf32, #tpu.memory_space<vmem>>, vector<16x128xf32>
    tpu.vector_store %arg4[%c0_12, %c0_13], %29 {strides = array<i32>} : memref<16x128xf32, #tpu.memory_space<vmem>>, vector<16x128xf32>,
    %31 = arith.mulf %1, %28 : vector<16x256xf32>
    %c0_14 = arith.constant 0 : index
    %c0_15 = arith.constant 0 : index
    %32 = vector.load %arg5[%c0_14, %c0_15] : memref<16x256xf32, #tpu.memory_space<vmem>>, vector<16x256xf32>
    tpu.vector_store %arg5[%c0_14, %c0_15], %31 {strides = array<i32>} : memref<16x256xf32, #tpu.memory_space<vmem>>, vector<16x256xf32>,
    return
  }
  func.func @transform_0(%arg0: i32) -> (i32, i32) {
    %c0_i32 = arith.constant 0 : i32
    %c0_i32_0 = arith.constant 0 : i32
    return %arg0, %c0_i32 : i32, i32
  }
  func.func @transform_1(%arg0: i32) -> (i32, i32) {
    %c0_i32 = arith.constant 0 : i32
    %c0_i32_0 = arith.constant 0 : i32
    return %arg0, %c0_i32 : i32, i32
  }
  func.func @transform_2(%arg0: i32) -> (i32, i32) {
    %c0_i32 = arith.constant 0 : i32
    %c0_i32_0 = arith.constant 0 : i32
    %c0_i32_1 = arith.constant 0 : i32
    return %c0_i32, %c0_i32_0 : i32, i32
  }
  func.func @transform_3(%arg0: i32) -> (i32, i32) {
    %c0_i32 = arith.constant 0 : i32
    %c0_i32_0 = arith.constant 0 : i32
    return %arg0, %c0_i32 : i32, i32
  }
  func.func @transform_4(%arg0: i32) -> (i32, i32) {
    %c0_i32 = arith.constant 0 : i32
    %c0_i32_0 = arith.constant 0 : i32
    return %arg0, %c0_i32 : i32, i32
  }
}

</mosaic_0001>

<bundles_post_ra>
// kernel: tpu_custom_call.1
= control target key start
LH: loop header
LB: loop body
LE: loop exit
PB: predicated region body
PF: predicated region fallthrough
CT: control target
= control target key end

     0   :  { %s1453_s0 = inlined_call_operand.hbm [shape: f32[32,128], index: 0, kind: input, shape index: {}]   ;;  %s1454_s1 = inlined_call_operand.hbm [shape: f32[32,256], index: 1, kind: input, shape index: {}]   ;;  %s1455_s2 = inlined_call_operand.hbm [shape: bf16[128,256], index: 2, kind: input, shape index: {}]   ;;  %s1456_s3 = inlined_call_operand.hbm [shape: f32[32,128], index: 3, kind: output, shape index: {0}]   ;;  %s1457_s4 = inlined_call_operand.hbm [shape: f32[32,256], index: 4, kind: output, shape index: {1}]  }
   0x1   :  { %1461 = sst [smem:[#allocation16_spill]] %s1453_s0 }
   0x2   :  { %1462 = sst [smem:[#allocation17_spill]] %s1455_s2 }
   0x3   :  { %10 = vsyncpa [#allocation3], 0 }
   0x4   :  { %12 = vsyncpa [#allocation3 + $0x1], 0 }
   0x5   :  { %13 = vsyncpa [#allocation6], 0 }
   0x6   :  { %15 = vsyncpa [#allocation6 + $0x1], 0 }
   0x7   :  { %16 = vsyncpa [#allocation4], 0 }
   0x8   :  { %18 = vsyncpa [#allocation4 + $0x1], 0 }
   0x9   :  { %19 = vsyncpa [#allocation10], 0 }
   0xa   :  { %21 = vsyncpa [#allocation10 + $0x1], 0  ;;  %s1118_s15 = smov 0   ;;  %s1120_s16 = smov 0  }
   0xb   :  { %s1122_s17 = smov 0   ;;  %s1124_s18 = smov 0  }
   0xc LB: > { %s1139_s19 = sadd.s32 4294967295, %s1077_s18   ;;  %s715_s20 = sadd.s32 4294967294, %s1077_s18   ;;  %s1077_s18 = sphi %s1124_s18, %s1481_s18   ;;  %s1073_s17 = sphi %s1122_s17, %s1480_s17   ;;  %s1069_s16 = sphi %s1120_s16, %s1479_s16   ;;  %s1065_s15 = sphi %s1118_s15, %s1478_s15  }
   0xd   : > { %p47_p0 = scmp.ne.s32.totalorder %s1069_s16, %s1065_s15  ;;  %p1458_p1 = scmp.eq.s32.totalorder %s1139_s19, 0 }
   0xe   : > { %p124_p3 = scmp.eq.s32.totalorder %s715_s20, 1  ;;  %p716_p5 = scmp.ge.s32.totalorder %s1077_s18, 1 }
   0xf   : > { %p1148_p4 = por %p1458_p1, %p47_p0  ;;  %p157_p7 = scmp.lt.s32.totalorder %s1077_s18, 3 }
  0x10   : > { %p1153_p6 = por %p124_p3, %p47_p0  ;;  %s1079_s24 = smov [#allocation7]  }
  0x11   : > { %s1463_s21 = scalar_select %p1148_p4, 1, 0 }
  0x12   : > { %s1464_s22 = scalar_select %p1153_p6, 1, 0 }
  0x13   : > { %p1158_p8 = pnand %p716_p5, %p157_p7  ;;  %s169_s25 = sshll.u32 %s1079_s24, 4  ;;  %s1162_s25 = int_to_ptr.vmem [resolvable:$true] %s169_s25 }
  0x14   : > { %s1174_s27 = sadd.s32 1, %s1077_s18   ;;  %s34_s28 = sadd.s32 1, %s1073_s17 }
  0x15   : > { %s1465_s23 = scalar_select %p1158_p8, 1, 0 }
  0x16   : > { %p775_p9 = pneg %p1158_p8  ;;  %s31_s29 = ssub.s32 %s1077_s18, %s1174_s27 }
  0x17   : > { %s1467_s2 = sld [smem:[#allocation17_spill]] }
  0x18   : > { %p1169_p11 = pnand %p775_p9, %p1458_p1 }
  0x1a   : > { %p885_p13 = pneg %p1169_p11 }
  0x1d   : > { %s883_s6 = scalar_lea.hbm %s1467_s2, 2048 }
  0x1e   : > { %p884_p12 = scmp.ne.s32.totalorder %s1467_s2, %s883_s6  ;;  %p890_p5 = scmp.lt.u32.totalorder %s883_s6, %s1467_s2 }
  0x20   : > { %p886_p0 = pnand %p885_p13, %p884_p12 }
  0x22   : > { %p887_p3 = pneg %p886_p0 }
  0x24   : > { %p892_p7 = pnand %p890_p5, %p887_p3 }
  0x26   : > { %895 = shalt.err (!%p892_p7)
}
  0x27   : > { %s896_s11 = scalar_lea.vmem %s1162_s25, 2048  ;;  %p904_p2 = scmp.lt.s32.totalorder %s1162_s25, %s1162_s25 }
  0x28   : > { %p897_p9 = scmp.ne.s32.totalorder %s1162_s25, %s896_s11  ;;  %p905_p6 = scmp.lt.s32.totalorder %s896_s11, %s896_s11 }
  0x2a   : > { %p899_p10 = pnand %p897_p9, %p885_p13  ;;  %p906_p4 = por %p905_p6, %p904_p2 }
  0x2c   : > { %p900_p1 = pneg %p899_p10 }
  0x2e   : > { %p907_p8 = pnand %p906_p4, %p900_p1 }
  0x30   : > { %910 = shalt.err (!%p907_p8)
}
  0x31   : > { %s1080_s12 = smov 128   ;;  %s1081_s13 = smov 8  }
  0x32   : > { %778 = dma.hbm_to_vmem [thread:$0]  (!%p1169_p11), %s1467_s2, 2048, %s1162_s25, [#allocation6], %s1080_s12, %s1080_s12, %s1081_s13  }
  0x33   : > { %p32_p1 = scmp.eq.s32.totalorder %s31_s29, 0  ;;  %p41_p2 = scmp.ne.s32.totalorder %s1073_s17, %s1069_s16 }
  0x34   : > { %p42_p4 = scmp.eq.s32.totalorder %s1077_s18, 0  ;;  %p794_p6 = scmp.lt.s32.totalorder %s1077_s18, 2 }
  0x35   : > { %s1208_s24 = scalar_select %p32_p1, %s1073_s17, %s34_s28  }
  0x36   : > { %p43_p8 = por %p42_p4, %p41_p2  ;;  %p1468_p10 = scmp.eq.s32.totalorder %s1139_s19, 1 }
  0x37   : > { %s1217_s26 = sand.u32 1, %s1073_s17   ;;  %s757_s5 = sshll.u32 %s1077_s18, 8 }
  0x38   : > { %p1212_p12 = por %p1468_p10, %p41_p2  ;;  %s719_s6 = sshll.u32 %s1217_s26, 4 }
  0x39   : > { %s1470_s0 = sld [smem:[#allocation16_spill]]  ;;  %s187_s28 = scalar_lea.vmem [#allocation2], %s719_s6 }
  0x3a   : > { %s194_s8 = sshll.u32 %s187_s28, 4  ;;  %p1226_p11 = pnand %p794_p6, %p43_p8  ;;  %s1230_s8 = int_to_ptr.vmem [resolvable:$true] %s194_s8 }
  0x3b   : > { %s204_s10 = sand.u32 1, %s1077_s18   ;;  %s184_s11 = scalar_lea.sflag [#allocation3], %s1217_s26 }
  0x3c   : > { %p913_p0 = pneg %p1226_p11 }
  0x3f   : > { %s1224_s29 = scalar_lea.hbm %s1470_s0, %s757_s5  ;;  %s916_s6 = scalar_lea.hbm %s1470_s0, 512 }
  0x40   : > { %s911_s14 = scalar_lea.hbm %s1224_s29, 256  ;;  %p917_p7 = scmp.lt.u32.totalorder %s1224_s29, %s1470_s0 }
  0x41   : > { %p912_p13 = scmp.ne.s32.totalorder %s1224_s29, %s911_s14  ;;  %p918_p9 = scmp.lt.u32.totalorder %s916_s6, %s911_s14 }
  0x42   : > { %p920_p2 = scmp.lt.u32.totalorder %s911_s14, %s1224_s29 }
  0x43   : > { %p914_p3 = pnand %p913_p0, %p912_p13  ;;  %p919_p1 = por %p918_p9, %p917_p7 }
  0x45   : > { %p915_p5 = pneg %p914_p3  ;;  %p921_p4 = por %p920_p2, %p919_p1 }
  0x47   : > { %p922_p6 = pnand %p921_p4, %p915_p5 }
  0x49   : > { %925 = shalt.err (!%p922_p6)
}
  0x4a   : > { %s926_s28 = scalar_lea.vmem %s1230_s8, 256  ;;  %s1082_s20 = smov [#allocation2]  }
  0x4b   : > { %p927_p8 = scmp.ne.s32.totalorder %s1230_s8, %s926_s28  ;;  %s931_s5 = sshll.u32 %s1082_s20, 4  ;;  %s932_s5 = int_to_ptr.vmem [resolvable:$false] %s931_s5 }
  0x4c   : > { %s933_s25 = scalar_lea.vmem %s932_s5, 512  ;;  %p934_p3 = scmp.lt.s32.totalorder %s1230_s8, %s932_s5 }
  0x4d   : > { %p929_p10 = pnand %p927_p8, %p913_p0  ;;  %p935_p7 = scmp.lt.s32.totalorder %s933_s25, %s926_s28 }
  0x4f   : > { %p930_p13 = pneg %p929_p10  ;;  %p936_p9 = por %p935_p7, %p934_p3 }
  0x51   : > { %p937_p1 = pnand %p936_p9, %p930_p13 }
  0x53   : > { %940 = shalt.err (!%p937_p1)
}
  0x54   : > { %782 = dma.hbm_to_vmem [thread:$0]  (!%p1226_p11), %s1224_s29, 256, %s1230_s8, %s184_s11, %s1080_s12, %s1080_s12, %s1081_s13  }
  0x55   : > { %s722_s14 = sshll.u32 %s1217_s26, 5  ;;  %s759_s6 = sshll.u32 %s1077_s18, 9 }
  0x56   : > { %s1269_s20 = scalar_lea.hbm %s1454_s1, %s759_s6  ;;  %s208_s5 = scalar_lea.vmem [#allocation5], %s722_s14 }
  0x57   : > { %s216_s25 = sshll.u32 %s208_s5, 4  ;;  %s1275_s0 = scalar_lea.sflag [#allocation6], %s204_s10  ;;  %s1271_s25 = int_to_ptr.vmem [resolvable:$true] %s216_s25 }
  0x58   : > { %s941_s2 = scalar_lea.hbm %s1269_s20, 512  ;;  %s946_s26 = scalar_lea.hbm %s1454_s1, 1024 }
  0x59   : > { %p942_p5 = scmp.ne.s32.totalorder %s1269_s20, %s941_s2  ;;  %p947_p6 = scmp.lt.u32.totalorder %s1269_s20, %s1454_s1 }
  0x5a   : > { %p948_p8 = scmp.lt.u32.totalorder %s946_s26, %s941_s2  ;;  %p950_p13 = scmp.lt.u32.totalorder %s941_s2, %s1269_s20 }
  0x5b   : > { %p944_p2 = pnand %p942_p5, %p913_p0 }
  0x5c   : > { %p949_p10 = por %p948_p8, %p947_p6 }
  0x5d   : > { %p945_p4 = pneg %p944_p2 }
  0x5e   : > { %p951_p3 = por %p950_p13, %p949_p10 }
  0x60   : > { %p952_p7 = pnand %p951_p3, %p945_p4 }
  0x62   : > { %955 = shalt.err (!%p952_p7)
}
  0x63   : > { %s956_s10 = scalar_lea.vmem %s1271_s25, 512  ;;  %s1083_s11 = smov [#allocation5]  }
  0x64   : > { %p957_p9 = scmp.ne.s32.totalorder %s1271_s25, %s956_s10  ;;  %s961_s14 = sshll.u32 %s1083_s11, 4  ;;  %s962_s14 = int_to_ptr.vmem [resolvable:$false] %s961_s14 }
  0x65   : > { %s963_s6 = scalar_lea.vmem %s962_s14, 1024  ;;  %p964_p2 = scmp.lt.s32.totalorder %s1271_s25, %s962_s14 }
  0x66   : > { %p959_p1 = pnand %p957_p9, %p913_p0  ;;  %p965_p6 = scmp.lt.s32.totalorder %s963_s6, %s956_s10 }
  0x68   : > { %p960_p5 = pneg %p959_p1  ;;  %p966_p8 = por %p965_p6, %p964_p2 }
  0x6a   : > { %p967_p10 = pnand %p966_p8, %p960_p5 }
  0x6c   : > { %970 = shalt.err (!%p967_p10)
}
  0x6d   : > { %s1084_s2 = smov 256   ;;  %s1085_s7 = smov 16  }
  0x6e   : > { %785 = dma.hbm_to_vmem [thread:$0]  (!%p1226_p11), %s1269_s20, 512, %s1271_s25, %s1275_s0, %s1084_s2, %s1084_s2, %s1085_s7  }
  0x6f   : > { %p1472_p0 = scmp.ne.s32.totalorder %s1465_s23, 0 }
  0x70   : > { %s1304_s28 = sand.u32 (!%p1472_p0), 1, %s1069_s16   ;;  %p1473_p4 = scmp.ne.s32.totalorder (!%p1472_p0), %s1463_s21, 0 }
  0x71   : > { %228 = sbr.rel (%p1472_p0) target bundleno = 764 (0x2fc), region = 32  ;;  %s727_s5 = sshll.u32 (!%p1472_p0), %s1304_s28, 4 }
  0x72   : > { %s231_s12 = scalar_lea.sflag (!%p1472_p0), [#allocation3], %s1304_s28  ;;  %s1310_s13 = scalar_lea.vmem (!%p1472_p0), [#allocation2], %s727_s5 }
  0x78   : > { %1044 = dma.done.wait (%p1473_p4), %s231_s12, 256  }
  0x79   : > { %1046 = vsyncadd (%p1473_p4), %s231_s12, 4294967040  ;;  %s239_s0 = sand.u32 1, %s1139_s19   ;;  %s728_s23 = sshll.u32 %s1304_s28, 5 }
  0x7a   : > { %s240_s9 = scalar_lea.sflag [#allocation6], %s239_s0  ;;  %s1320_s20 = scalar_lea.vmem [#allocation5], %s728_s23 }
  0x7b   : > { %1048 = dma.done.wait (%p1473_p4), %s240_s9, 512  }
  0x7c   : > { %1050 = vsyncadd (%p1473_p4), %s240_s9, 4294966784  ;;  %p1474_p11 = scmp.eq.s32.totalorder %s1139_s19, 0 }
  0x7e   : > { %1052 = dma.done.wait (%p1474_p11), [#allocation6], 2048   ;;  %p1475_p13 = pmov %p1474_p11 }
  0x7f   : > { %v1086_v0 = vmov 0   ;;  %v839_v1 = vld [vmem:[#allocation7 + $0x4] ss:$8 sps:$4 sm:$0xff]   ;;  %v841_v2 = vld [vmem:[#allocation7] ss:$8 sps:$4 sm:$0xff]   ;;  %v1334_v10 = vld [vmem:[%s1320_s20 + $0x18] sm:$0xff] }
  0x80   : > { %1054 = vsyncadd (%p1475_p13), [#allocation6], 4294965248  ;;  %467 = vmatprep.mubr.bf16.mxu1 %v1086_v0  ;;  %392 = vmatprep.subr.bf16.mxu0 %v839_v1  ;;  %v842_v3 = vld [vmem:[#allocation7 + $0x14] ss:$8 sps:$4 sm:$0xff]   ;;  %v844_v4 = vld [vmem:[#allocation7 + $0x10] ss:$8 sps:$4 sm:$0xff]  }
  0x81   : > { %435 = vmatprep.subr.bf16.mxu1 %v839_v1  ;;  %393 = vmatpush1.bf16.xpose.msra.mxu0 %v841_v2  ;;  %v845_v5 = vld [vmem:[#allocation7 + $0x24] ss:$8 sps:$4 sm:$0xff]   ;;  %v847_v6 = vld [vmem:[#allocation7 + $0x20] ss:$8 sps:$4 sm:$0xff]   ;;  %v848_v7 = vld [vmem:[#allocation7 + $0x34] ss:$8 sps:$4 sm:$0xff]  }
  0x82   : > { %436 = vmatpush1.bf16.msra.mxu1 %v841_v2  ;;  %394 = vmatprep.subr.bf16.mxu0 %v842_v3  ;;  %v850_v8 = vld [vmem:[#allocation7 + $0x30] ss:$8 sps:$4 sm:$0xff]   ;;  %v1331_v9 = vld [vmem:[%s1320_s20 + $0x8] sm:$0xff]  ;;  %v854_v14 = vld [vmem:[#allocation7 + $0x54] ss:$8 sps:$4 sm:$0xff]   ;;  %s760_s21 = sshll.u32 %s1139_s19, 8 }
  0x83   : > { %437 = vmatprep.subr.bf16.mxu1 %v842_v3  ;;  %v851_v11 = vld [vmem:[#allocation7 + $0x44] ss:$8 sps:$4 sm:$0xff]   ;;  %v311_v12 = vpack.c.bf16 %v1334_v10, %v1331_v9  ;;  %v853_v13 = vld [vmem:[#allocation7 + $0x40] ss:$8 sps:$4 sm:$0xff]   ;;  %v856_v15 = vld [vmem:[#allocation7 + $0x50] ss:$8 sps:$4 sm:$0xff]   ;;  %s1361_s10 = scalar_lea.hbm %s1456_s3, %s760_s21 }
  0x84   : > { %v857_v16 = vld [vmem:[#allocation7 + $0x64] ss:$8 sps:$4 sm:$0xff]   ;;  %v859_v17 = vld [vmem:[#allocation7 + $0x60] ss:$8 sps:$4 sm:$0xff]   ;;  %v860_v18 = vld [vmem:[#allocation7 + $0x74] ss:$8 sps:$4 sm:$0xff]  }
  0x85   : > { %424 = vmatprep.mubr.bf16.mxu0 %v311_v12  ;;  %v862_v19 = vld [vmem:[#allocation7 + $0x70] ss:$8 sps:$4 sm:$0xff]   ;;  %v1347_v23 = vld [vmem:[%s1320_s20] sm:$0xff]  ;;  %s274_s25 = scalar_lea.vmem [#allocation8], %s727_s5  ;;  %s762_s11 = sshll.u32 %s1139_s19, 9 }
  0x86   : > { %438 = vmatpush1.bf16.msra.mxu1 %v844_v4  ;;  %v1339_v20 = vld [vmem:[%s1310_s13] sm:$0xff]  ;;  %v1342_v21 = vld [vmem:[%s1310_s13 + $0x8] sm:$0xff]  ;;  %s561_s26 = sshll.u32 %s274_s25, 4  ;;  %s1368_s14 = scalar_lea.vmem [#allocation9], %s728_s23  ;;  %s1363_s26 = int_to_ptr.vmem [resolvable:$true] %s561_s26 }
  0x87   : > { %439 = vmatprep.subr.bf16.mxu1 %v845_v5  ;;  %v309_v22 = vpack.c.bf16 %v1342_v21, %v1339_v20  ;;  %v1350_v24 = vld [vmem:[%s1320_s20 + $0x10] sm:$0xff]  ;;  %s578_s6 = sshll.u32 %s1368_s14, 4  ;;  %s1377_s7 = scalar_lea.hbm %s1457_s4, %s762_s11  ;;  %s1379_s6 = int_to_ptr.vmem [resolvable:$true] %s578_s6 }
  0x88   : > { %v310_v25 = vpack.c.bf16 %v1350_v24, %v1347_v23  ;;  %s543_s5 = scalar_lea.sflag [#allocation4], %s1304_s28  ;;  %s971_s12 = scalar_lea.vmem %s1363_s26, 256 }
  0x89   : > { %395 = vmatpush1.bf16.xpose.msra.mxu0 %v844_v4  ;;  %p972_p3 = scmp.ne.s32.totalorder %s1363_s26, %s971_s12  ;;  %s1087_s13 = smov [#allocation8]  }
  0x8a   : > { %440 = vmatpush1.bf16.msra.mxu1 %v847_v6  ;;  %396 = vmatprep.subr.bf16.mxu0 %v845_v5  ;;  %s975_s0 = sshll.u32 %s1087_s13, 4  ;;  %s976_s0 = int_to_ptr.vmem [resolvable:$false] %s975_s0 }
  0x8b   : > { %441 = vmatprep.subr.bf16.mxu1 %v848_v7  ;;  %p973_p7 = pnand %p972_p3, %p1212_p12  ;;  %s977_s23 = scalar_lea.vmem %s976_s0, 512 }
  0x8c   : > { %p978_p1 = scmp.lt.s32.totalorder %s1363_s26, %s976_s0  ;;  %p979_p5 = scmp.lt.s32.totalorder %s977_s23, %s971_s12 }
  0x8d   : > { %p974_p9 = pneg %p973_p7 }
  0x8e   : > { %442 = vmatpush1.bf16.msra.mxu1 %v850_v8  ;;  %p980_p2 = por %p979_p5, %p978_p1 }
  0x8f   : > { %443 = vmatprep.subr.bf16.mxu1 %v851_v11 }
  0x90   : > { %p981_p6 = pnand %p980_p2, %p974_p9 }
  0x91   : > { %397 = vmatpush1.bf16.xpose.msra.mxu0 %v847_v6 }
  0x92   : > { %444 = vmatpush1.bf16.msra.mxu1 %v853_v13  ;;  %398 = vmatprep.subr.bf16.mxu0 %v848_v7 }
  0x93   : > { %445 = vmatprep.subr.bf16.mxu1 %v854_v14 }
  0x96   : > { %446 = vmatpush1.bf16.msra.mxu1 %v856_v15 }
  0x97   : > { %447 = vmatprep.subr.bf16.mxu1 %v857_v16 }
  0x99   : > { %399 = vmatpush1.bf16.xpose.msra.mxu0 %v850_v8 }
  0x9a   : > { %448 = vmatpush1.bf16.msra.mxu1 %v859_v17  ;;  %400 = vmatprep.subr.bf16.mxu0 %v851_v11 }
  0x9b   : > { %449 = vmatprep.subr.bf16.mxu1 %v860_v18 }
  0x9e   : > { %450 = vmatpush1.bf16.msra.mxu1 %v862_v19 }
  0xa1   : > { %468 = vmatmul.mubr.bf16.vlgmr.msra.gmra.mrb[0].mxu1 %v309_v22  ;;  %401 = vmatpush1.bf16.xpose.msra.mxu0 %v853_v13 }
  0xa2   : > { %402 = vmatprep.subr.bf16.mxu0 %v854_v14 }
  0xa9   : > { %403 = vmatpush1.bf16.xpose.msra.mxu0 %v856_v15 }
  0xaa   : > { %404 = vmatprep.subr.bf16.mxu0 %v857_v16 }
  0xb1   : > { %405 = vmatpush1.bf16.xpose.msra.mxu0 %v859_v17 }
  0xb2   : > { %406 = vmatprep.subr.bf16.mxu0 %v860_v18 }
  0xb9   : > { %407 = vmatpush1.bf16.xpose.msra.mxu0 %v862_v19 }
  0xc0   : > { %425 = vmatmul.mubr.bf16.vlgmr.msra.gmra.mrb[0].mxu0 %v310_v25 }
 0x174   : > { %v469_v26 = vpop.f32.mrb[0].mxu1 }
 0x175   : > { %v478_v27 = vmax.f32 %v469_v26, 0.0  ;;  %v471_v28 = vpop.f32.mrb[1].mxu1 }
 0x176   : > { %v479_v29 = vmax.f32 %v471_v28, 0.0  ;;  %v473_v30 = vpop.f32.mrb[2].mxu1 }
 0x177   : > { %v480_v31 = vmax.f32 %v473_v30, 0.0  ;;  %v475_v32 = vpop.f32.mrb[3].mxu1 }
 0x178   : > { %v481_v33 = vmax.f32 %v475_v32, 0.0  ;;  %v500_v34 = vmax.f32 %v478_v27, %v479_v29 }
 0x17a   : > { %501 = vmax.xlane.f32.xlu0 %v500_v34  ;;  %v503_v35 = vmax.f32 %v480_v31, %v481_v33 }
 0x17e   : > { %504 = vmax.xlane.f32.xlu0 %v503_v35 }
 0x193   : > { %v426_v36 = vpop.f32.mrb[0].mxu0 }
 0x194   : > { %v433_v37 = vmax.f32 %v426_v36, 0.0  ;;  %v428_v38 = vpop.f32.mrb[1].mxu0 }
 0x195   : > { %v429_v39 = vpop.f32.mrb[2].mxu0 }
 0x196   : > { %482 = vmax.xlane.f32.xlu1 %v433_v37  ;;  %v431_v40 = vpop.f32.mrb[3].mxu0  ;;  %v434_v41 = vmax.f32 %v429_v39, 0.0 }
 0x19a   : > { %484 = vmax.xlane.f32.xlu1 %v434_v41 }
 0x207   : > { %v502_v42 = vpop.xlane.xlu0 %501 }
 0x208   : > { %v506_v43 = vsub.f32 %v478_v27, %v502_v42  ;;  %v507_v44 = vsub.f32 %v479_v29, %v502_v42 }
 0x20a   : > { %v510_v46 = vmul.f32 1.442695, %v506_v43  ;;  %v512_v48 = vmul.f32 1.442695, %v507_v44 }
 0x20b   : > { %v505_v45 = vpop.xlane.xlu0 %504 }
 0x20c   : > { %v508_v47 = vsub.f32 %v480_v31, %v505_v45  ;;  %v509_v49 = vsub.f32 %v481_v33, %v505_v45  ;;  %863 = vpow2.f32 %v510_v46 }
 0x20d   : > { %865 = vpow2.f32 %v512_v48 }
 0x20e   : > { %v514_v52 = vmul.f32 1.442695, %v508_v47  ;;  %v516_v54 = vmul.f32 1.442695, %v509_v49 }
 0x216   : > { %v864_v58 = vpop.eup %863 }
 0x217   : > { %v866_v59 = vpop.eup %865 }
 0x218   : > { %v518_v63 = vadd.f32 %v866_v59, %v864_v58 }
 0x223   : > { %v483_v50 = vpop.xlane.xlu1 %482 }
 0x224   : > { %v486_v51 = vsub.f32 %v433_v37, %v483_v50 }
 0x226   : > { %v488_v53 = vmul.f32 1.442695, %v486_v51 }
 0x227   : > { %v485_v55 = vpop.xlane.xlu1 %484 }
 0x228   : > { %867 = vpow2.f32 %v488_v53  ;;  %v487_v56 = vsub.f32 %v434_v41, %v485_v55 }
 0x229   : > { %869 = vpow2.f32 %v514_v52 }
 0x22a   : > { %v490_v57 = vmul.f32 1.442695, %v487_v56  ;;  %871 = vpow2.f32 %v516_v54 }
 0x22c   : > { %873 = vpow2.f32 %v490_v57 }
 0x232   : > { %v868_v60 = vpop.eup %867 }
 0x233   : > { %492 = vadd.xlane.f32.xlu0 %v868_v60  ;;  %v870_v61 = vpop.eup %869 }
 0x234   : > { %v872_v62 = vpop.eup %871 }
 0x235   : > { %v521_v1 = vadd.f32 %v872_v62, %v870_v61 }
 0x236   : > { %v874_v0 = vpop.eup %873 }
 0x237   : > { %494 = vadd.xlane.f32.xlu1 %v874_v0  ;;  %519 = vadd.xlane.f32.xlu0 %v518_v63 }
 0x23b   : > { %522 = vadd.xlane.f32.xlu1 %v521_v1 }
 0x2c0   : > { %v493_v2 = vpop.xlane.xlu0 %492 }
 0x2c1   : > { %875 = vrcp.f32 %v493_v2 }
 0x2c4   : > { %v495_v3 = vpop.xlane.xlu1 %494  ;;  %v520_v4 = vpop.xlane.xlu0 %519 }
 0x2c5   : > { %877 = vrcp.f32 %v495_v3 }
 0x2c6   : > { %879 = vrcp.f32 %v520_v4 }
 0x2c8   : > { %v523_v5 = vpop.xlane.xlu1 %522 }
 0x2c9   : > { %881 = vrcp.f32 %v523_v5 }
 0x2cb   : > { %v876_v6 = vpop.eup %875 }
 0x2cc   : > { %v497_v7 = vmul.f32 %v876_v6, %v868_v60 }
 0x2ce   : > { %v530_v8 = vmul.f32 %v497_v7, %v1339_v20 }
 0x2cf   : > { %v878_v11 = vpop.eup %877 }
 0x2d0   : > { %v880_v12 = vpop.eup %879  ;;  %v499_v13 = vmul.f32 %v878_v11, %v874_v0  ;;  %532 = vst [vmem:[%s274_s25] sm:$0xff] %v530_v8 }
 0x2d1   : > { %v525_v14 = vmul.f32 %v880_v12, %v864_v58  ;;  %v526_v15 = vmul.f32 %v880_v12, %v866_v59 }
 0x2d2   : > { %v531_v16 = vmul.f32 %v499_v13, %v1342_v21 }
 0x2d3   : > { %v882_v17 = vpop.eup %881  ;;  %v534_v18 = vmul.f32 %v525_v14, %v1347_v23  ;;  %v535_v19 = vmul.f32 %v526_v15, %v1331_v9 }
 0x2d4   : > { %v528_v20 = vmul.f32 %v882_v17, %v870_v61  ;;  %v529_v22 = vmul.f32 %v882_v17, %v872_v62  ;;  %533 = vst [vmem:[%s274_s25 + $0x8] sm:$0xff] %v531_v16 }
 0x2d5   : > { %538 = vst [vmem:[%s1368_s14] sm:$0xff] %v534_v18  ;;  %539 = vst [vmem:[%s1368_s14 + $0x8] sm:$0xff] %v535_v19 }
 0x2d6   : > { %984 = shalt.err (!%p981_p6)
}
 0x2d7   : > { %s985_s9 = scalar_lea.hbm %s1361_s10, 256  ;;  %s989_s25 = scalar_lea.hbm %s1456_s3, 512 }
 0x2d8   : > { %p986_p8 = scmp.ne.s32.totalorder %s1361_s10, %s985_s9  ;;  %p990_p4 = scmp.lt.u32.totalorder %s1361_s10, %s1456_s3 }
 0x2d9   : > { %p991_p11 = scmp.lt.u32.totalorder %s989_s25, %s985_s9  ;;  %p993_p3 = scmp.lt.u32.totalorder %s985_s9, %s1361_s10 }
 0x2da   : > { %p987_p10 = pnand %p986_p8, %p1212_p12 }
 0x2db   : > { %p992_p13 = por %p991_p11, %p990_p4 }
 0x2dc   : > { %p988_p0 = pneg %p987_p10 }
 0x2dd   : > { %p994_p7 = por %p993_p3, %p992_p13 }
 0x2df   : > { %p995_p9 = pnand %p994_p7, %p988_p0 }
 0x2e1   : > { %998 = shalt.err (!%p995_p9)
}
 0x2e2   : > { %s1088_s11 = smov 128   ;;  %s1089_s19 = smov 8   ;;  %v536_v9 = vmul.f32 %v528_v20, %v1350_v24  ;;  %v537_v21 = vmul.f32 %v529_v22, %v1334_v10 }
 0x2e3   : > { %771 = dma.vmem_to_hbm [thread:$0]  (%p1212_p12), %s1363_s26, 256, %s1361_s10, %s543_s5, %s1088_s11, %s1088_s11, %s1089_s19  }
 0x2e4   : > { %540 = vst [vmem:[%s1368_s14 + $0x10] sm:$0xff] %v536_v9  ;;  %541 = vst [vmem:[%s1368_s14 + $0x18] sm:$0xff] %v537_v21  ;;  %s548_s2 = scalar_lea.sflag [#allocation10], %s1304_s28  ;;  %s999_s12 = scalar_lea.vmem %s1379_s6, 512 }
 0x2e5   : > { %p1000_p1 = scmp.ne.s32.totalorder %s1379_s6, %s999_s12  ;;  %s1090_s13 = smov [#allocation9]  }
 0x2e6   : > { %s1003_s0 = sshll.u32 %s1090_s13, 4  ;;  %s1004_s0 = int_to_ptr.vmem [resolvable:$false] %s1003_s0 }
 0x2e7   : > { %p1001_p5 = pnand %p1000_p1, %p1212_p12  ;;  %s1005_s23 = scalar_lea.vmem %s1004_s0, 1024 }
 0x2e8   : > { %p1006_p6 = scmp.lt.s32.totalorder %s1379_s6, %s1004_s0  ;;  %p1007_p8 = scmp.lt.s32.totalorder %s1005_s23, %s999_s12 }
 0x2e9   : > { %p1002_p2 = pneg %p1001_p5 }
 0x2ea   : > { %p1008_p10 = por %p1007_p8, %p1006_p6 }
 0x2ec   : > { %p1009_p0 = pnand %p1008_p10, %p1002_p2 }
 0x2ee   : > { %1012 = shalt.err (!%p1009_p0)
}
 0x2ef   : > { %s1013_s26 = scalar_lea.hbm %s1377_s7, 512  ;;  %s1017_s5 = scalar_lea.hbm %s1457_s4, 1024 }
 0x2f0   : > { %p1014_p4 = scmp.ne.s32.totalorder %s1377_s7, %s1013_s26  ;;  %p1018_p3 = scmp.lt.u32.totalorder %s1377_s7, %s1457_s4 }
 0x2f1   : > { %p1019_p7 = scmp.lt.u32.totalorder %s1017_s5, %s1013_s26  ;;  %p1021_p1 = scmp.lt.u32.totalorder %s1013_s26, %s1377_s7 }
 0x2f2   : > { %p1015_p11 = pnand %p1014_p4, %p1212_p12 }
 0x2f3   : > { %p1020_p9 = por %p1019_p7, %p1018_p3 }
 0x2f4   : > { %p1016_p13 = pneg %p1015_p11 }
 0x2f5   : > { %p1022_p5 = por %p1021_p1, %p1020_p9 }
 0x2f7   : > { %p1023_p2 = pnand %p1022_p5, %p1016_p13 }
 0x2f9   : > { %1026 = shalt.err (!%p1023_p2)
}
 0x2fa   : > { %s1091_s21 = smov 256   ;;  %s1092_s25 = smov 16  }
 0x2fb   : > { %772 = dma.vmem_to_hbm [thread:$0]  (%p1212_p12), %s1379_s6, 512, %s1377_s7, %s548_s2, %s1091_s21, %s1091_s21, %s1092_s25  }
 0x2fc PF: > { %s593_s29 = sand.u32 1, %s1065_s15   ;;  %p1476_p6 = scmp.ne.s32.totalorder %s1464_s22, 0 }
 0x2fd   : > { %p1477_p8 = scmp.ge.s32.totalorder %s1077_s18, 2  ;;  %s594_s8 = scalar_lea.sflag [#allocation4], %s593_s29 }
 0x2ff   : > { %p787_p10 = pnand %p1477_p8, %p1476_p6 }
 0x301   : > { %1056 = dma.done.wait (!%p787_p10), %s594_s8, 256  }
 0x302   : > { %1058 = vsyncadd (!%p787_p10), %s594_s8, 4294967040  ;;  %s603_s11 = scalar_lea.sflag [#allocation10], %s593_s29 }
 0x303   : > { %1060 = dma.done.wait (!%p787_p10), %s603_s11, 512  }
 0x304   : > { %1062 = vsyncadd (!%p787_p10), %s603_s11, 4294966784  ;;  %p24_p12 = scmp.ge.s32.totalorder %s1174_s27, 4   ;;  %s1478_s15 = smov %s1069_s16 }
 0x305   : > { %s1479_s16 = smov %s1073_s17  ;;  %s1480_s17 = smov %s1208_s24 }
 0x306   : > { %s1481_s18 = smov %s1174_s27  ;;  %26 = sbr.rel (!%p24_p12) target bundleno = 12 (0xc), region = 111 }
 0x30d   :  { %608 = vsyncpa [#allocation3], 1 }
 0x30e   :  { %610 = vsyncpa [#allocation3 + $0x1], 1 }
 0x30f   :  { %611 = vsyncpa [#allocation6], 1 }
 0x310   :  { %613 = vsyncpa [#allocation6 + $0x1], 1 }
 0x311   :  { %614 = vsyncpa [#allocation4], 1 }
 0x312   :  { %616 = vsyncpa [#allocation4 + $0x1], 1 }
 0x313   :  { %617 = vsyncpa [#allocation10], 1 }
 0x314   :  { %619 = vsyncpa [#allocation10 + $0x1], 1 }

</bundles_post_ra>
